<compile_context>
chip_gen: v5e
topology: v5e:2x2
jax: 0.10.0
libtpu: 0.0.40
codegen_flags: <defaults>
</compile_context>

<pallas_src>
import jax
import jax.numpy as jnp
from jax.experimental import pallas as pl
from jax.experimental.pallas import tpu as pltpu


def _linear_kernel(x_ref, w_ref, b_ref, o_ref):
    # x_ref: (TB, D) VMEM tile, w_ref: (D, 1) VMEM (resident), b_ref: (1, 1) SMEM.
    x = x_ref[...]
    w = w_ref[...]
    b = b_ref[0, 0]                                     # scalar read from SMEM
    o_ref[...] = jnp.dot(x, w, preferred_element_type=jnp.float32) + b
    # TODO(synk): output is (TB, 1) (lane width 1 -> masked stores); a lane-dense
    # (1, TB) layout is a secondary win only when D is small, skipped for clarity.


def _round_up(n, m):
    return ((n + m - 1) // m) * m


def linear_regression_forward(x, weight, bias, *,
                              max_block_rows=2048,
                              x_vmem_budget_bytes=8 * 1024 * 1024):
    """x: (B, D); weight: (1, D) (torch layout); bias: (1,) -> (B, 1) f32."""
    B, D = x.shape
    bytes_per_row = 2 * D * jnp.dtype(x.dtype).itemsize     # double-buffered x tile
    tb_fit = max(8, (x_vmem_budget_bytes // bytes_per_row) // 8 * 8)
    TB = int(min(max_block_rows, tb_fit, _round_up(B, 8)))  # multiple of 8
    B_pad = _round_up(B, TB)
    if B_pad != B:
        x = jnp.pad(x, ((0, B_pad - B), (0, 0)))             # padded rows sliced off below

    w_t = weight.T.astype(x.dtype)                           # (D, 1)
    b2 = bias.reshape(1, 1).astype(jnp.float32)              # (1, 1) scalar for SMEM

    grid = (B_pad // TB,)
    out = pl.pallas_call(
        _linear_kernel,
        out_shape=jax.ShapeDtypeStruct((B_pad, 1), jnp.float32),
        grid=grid,
        in_specs=[
            # x: streamed per batch tile (double-buffered by the pipeline).
            pl.BlockSpec((TB, D), lambda i: (i, 0)),
            # weight: constant index_map -> stays VMEM-resident, DMA'd once.
            pl.BlockSpec((D, 1), lambda i: (0, 0)),
            # bias: single scalar in SMEM, no VMEM DMA / vreg broadcast machinery.
            pl.BlockSpec((1, 1), lambda i: (0, 0), memory_space=pltpu.SMEM),
        ],
        out_specs=pl.BlockSpec((TB, 1), lambda i: (i, 0)),
        compiler_params=pltpu.CompilerParams(
            dimension_semantics=("parallel",),               # megacore on v7x
        ),
        cost_estimate=pl.CostEstimate(
            flops=2 * B_pad * D,
            bytes_accessed=4 * (B_pad * D + D + B_pad),
            transcendentals=0,
        ),
    )(x, w_t, b2)
    return out[:B]


def init_linear_params(key, input_dim):
    """Deterministic init matching torch.nn.Linear(input_dim, 1) shapes/semantics
    (uniform in [-1/sqrt(fan_in), 1/sqrt(fan_in)])."""
    kw, kb = jax.random.split(key)
    bound = 1.0 / jnp.sqrt(jnp.float32(input_dim))
    weight = jax.random.uniform(kw, (1, input_dim), jnp.float32, -bound, bound)
    bias = jax.random.uniform(kb, (1,), jnp.float32, -bound, bound)
    return weight, bias


if __name__ == "__main__":
    key = jax.random.PRNGKey(0)
    k_x, k_p, k_x2 = jax.random.split(key, 3)

    batch, input_dim = 8, 32
    x = jax.random.normal(k_x, (batch, input_dim), dtype=jnp.float32)
    weight, bias = init_linear_params(k_p, input_dim)

    out = linear_regression_forward(x, weight, bias)
    out = jax.block_until_ready(out)

    ref = x @ weight.T + bias
    assert out.shape == (batch, 1)
    assert jnp.allclose(out, ref, atol=1e-5, rtol=1e-5)

    # Second case: exercises multi-step grid, batch padding, and parallel axis.
    batch2 = 200
    x2 = jax.random.normal(k_x2, (batch2, input_dim), dtype=jnp.float32)
    out2 = linear_regression_forward(x2, weight, bias, max_block_rows=64)
    out2 = jax.block_until_ready(out2)
    ref2 = x2 @ weight.T + bias
    assert out2.shape == (batch2, 1)
    assert jnp.allclose(out2, ref2, atol=1e-5, rtol=1e-5)

    # TODO(synk): regularization_loss() is a training-time scalar reduction over
    # parameters, not part of forward(); left in plain JAX if ever needed.

    print("KERNEL_OK")
</pallas_src>

<mosaic_0001>
module attributes {stable_mosaic.version = 11 : i64} {
  func.func @_linear_kernel(%arg0: i32, %arg1: memref<8x32xf32, #tpu.memory_space<vmem>>, %arg2: memref<32x1xf32, #tpu.memory_space<vmem>>, %arg3: memref<1x1xf32, #tpu.memory_space<smem>>, %arg4: memref<8x1xf32, #tpu.memory_space<vmem>>) attributes {dimension_semantics = [#tpu.dimension_semantics<parallel>], iteration_bounds = array<i64: 1>, scalar_prefetch = 0 : i64, scratch_operands = 0 : i64, tpu.core_type = #tpu.core_type<tc>, window_params = [{transform_indices = @transform_0, window_bounds = array<i64: 8, 32>}, {pipeline_mode = #tpu.pipeline_mode<synchronous>, transform_indices = @transform_1, window_bounds = array<i64: 32, 1>}, {transform_indices = @transform_2, window_bounds = array<i64: 1, 1>}, {transform_indices = @transform_3, window_bounds = array<i64: 8, 1>}]} {
    %c0 = arith.constant 0 : index
    %c0_0 = arith.constant 0 : index
    %0 = vector.load %arg1[%c0, %c0_0] : memref<8x32xf32, #tpu.memory_space<vmem>>, vector<8x32xf32>
    %c0_1 = arith.constant 0 : index
    %c0_2 = arith.constant 0 : index
    %1 = vector.load %arg2[%c0_1, %c0_2] : memref<32x1xf32, #tpu.memory_space<vmem>>, vector<32x1xf32>
    %c0_3 = arith.constant 0 : index
    %c0_4 = arith.constant 0 : index
    %2 = memref.load %arg3[%c0_3, %c0_4] : memref<1x1xf32, #tpu.memory_space<smem>>
    %cst = arith.constant dense<0.000000e+00> : vector<8x1xf32>
    %3 = tpu.matmul %0, %1, %cst {dimension_numbers = #tpu.dot_dimension_numbers<[1], [0], [0], [1], [0, 0, 1, 1], [], []>} : vector<8x32xf32>, vector<32x1xf32>, vector<8x1xf32> -> vector<8x1xf32>
    %4 = vector.broadcast %2 : f32 to vector<8x1xf32>
    %5 = arith.addf %3, %4 : vector<8x1xf32>
    %c0_5 = arith.constant 0 : index
    %c0_6 = arith.constant 0 : index
    %6 = vector.load %arg4[%c0_5, %c0_6] : memref<8x1xf32, #tpu.memory_space<vmem>>, vector<8x1xf32>
    tpu.vector_store %arg4[%c0_5, %c0_6], %5 {strides = array<i32>} : memref<8x1xf32, #tpu.memory_space<vmem>>, vector<8x1xf32>,
    return
  }
  func.func @transform_0(%arg0: i32) -> (i32, i32) {
    %c0_i32 = arith.constant 0 : i32
    %c0_i32_0 = arith.constant 0 : i32
    return %arg0, %c0_i32 : i32, i32
  }
  func.func @transform_1(%arg0: i32) -> (i32, i32) {
    %c0_i32 = arith.constant 0 : i32
    %c0_i32_0 = arith.constant 0 : i32
    %c0_i32_1 = arith.constant 0 : i32
    return %c0_i32, %c0_i32_0 : i32, i32
  }
  func.func @transform_2(%arg0: i32) -> (i32, i32) {
    %c0_i32 = arith.constant 0 : i32
    %c0_i32_0 = arith.constant 0 : i32
    %c0_i32_1 = arith.constant 0 : i32
    return %c0_i32, %c0_i32_0 : i32, i32
  }
  func.func @transform_3(%arg0: i32) -> (i32, i32) {
    %c0_i32 = arith.constant 0 : i32
    %c0_i32_0 = arith.constant 0 : i32
    return %arg0, %c0_i32 : i32, i32
  }
}

</mosaic_0001>

<bundles_post_ra>
// kernel: tpu_custom_call.1
= control target key start
LH: loop header
LB: loop body
LE: loop exit
PB: predicated region body
PF: predicated region fallthrough
CT: control target
= control target key end

     0   :  { %vm22_vm0 = vcmask 261120   ;;  %vm46_vm1 = vcmask 7168   ;;  %s94_s1 = inlined_call_operand.vmem [shape: f32[32,1], index: 1, kind: input, shape index: {}]   ;;  %s95_s0 = inlined_call_operand.vmem [shape: f32[8,32], index: 0, kind: input, shape index: {}]   ;;  %s96_s2 = inlined_call_operand.<no memory space> [shape: f32[1,1], index: 2, kind: input, shape index: {}]   ;;  %s97_s3 = inlined_call_operand.vmem [shape: f32[8,1], index: 3, kind: output, shape index: {}]  }
   0x1   :  { %v19_v0 = vld [vmem:[%s94_s1 + $0x18] sm:$0xff]  ;;  %v18_v1 = vld [vmem:[%s94_s1 + $0x10] sm:$0xff]  ;;  %v17_v2 = vld [vmem:[%s94_s1 + $0x8] sm:$0xff]  ;;  %v21_v5 = vstv %s96_s2 }
   0x2   :  { %38 = vmatpush.msra.mxu0 %v19_v0  ;;  %v16_v3 = vld [vmem:[%s94_s1] sm:$0xff] }
   0x3   :  { %v15_v4 = vld [vmem:[%s95_s0] sm:$0xff] }
   0x4   :  { %39 = vmatpush.msra.mxu0 %v18_v1 }
   0x6   :  { %40 = vmatpush.msra.mxu0 %v17_v2 }
   0x8   :  { %41 = vmatpush.msra.mxu0 %v16_v3 }
   0x9   :  { %52 = vmatmul.msk.f32.vlgmr.msra.gmra.mxu0 %vm22_vm0, %v15_v4 }
  0x86   :  { %v43_v6 = vpop.f32.mrf.mxu0 }
  0x87   :  { %v44_v7 = vadd.f32 %v43_v6, %v21_v5 }
  0x89   :  { %47 = vst.msk [vmem:[%s97_s3] sm:$0xff] %vm46_vm1, %v44_v7 }

</bundles_post_ra>
